<compile_context>
chip_gen: v5e
topology: v5e:2x2
jax: 0.10.0
libtpu: 0.0.40
codegen_flags: <defaults>
</compile_context>

<pallas_src>
import math
import numpy as np
import jax
import jax.numpy as jnp
from jax.experimental import pallas as pl
from jax.experimental.pallas import tpu as pltpu

_LANE = 128
_VMEM_LIMIT_BYTES = 32 * 1024 * 1024  # explicit: above v5e's 16 MiB scoped default


def _pe_add_kernel(x_ref, pe_ref, o_ref):
    # x_ref / o_ref: (tb, tr, 128); pe_ref: (tr, 128) -> broadcasts over batch.
    o_ref[...] = (x_ref[...] + pe_ref[...]).astype(o_ref.dtype)


def build_pe_table(max_len, d_model):
    """Reproduce the PyTorch __init__ buffer exactly.

    NOTE: the reference module computes
        div_term = exp(arange(0, max_len)[:, None] - log(10000)/d_model)
    (a per-position exp, NOT the usual exp(arange(0, d_model, 2) * -ln(1e4)/D)),
    so angle = position * e^position overflows float32 near position ~ 85 and
    sin/cos lose precision well before that.  It is reproduced verbatim because
    it is the spec; callers must keep max_len modest (as the demo does).
    """
    position = np.arange(0, max_len, dtype=np.float32)[:, None]              # (L, 1)
    div_term = np.exp(np.arange(0, max_len, dtype=np.float32)[:, None]
                      - math.log(10000.0) / d_model)                          # (L, 1)
    angle = position * div_term                                               # (L, 1)
    pe = np.zeros((max_len, d_model), dtype=np.float32)
    pe[:, 0::2] = np.sin(angle)   # every even column shares one sin value
    pe[:, 1::2] = np.cos(angle)   # every odd column shares one cos value
    return jnp.asarray(pe)                                                    # (L, D)


def _sublane_pack(dtype):
    # f32 -> 8, bf16/f16 -> 16, int8/fp8 -> 32 packed sublanes per vreg.
    return 8 * max(1, 4 // jnp.dtype(dtype).itemsize)


def _per_buffer_budget_bytes():
    # v7x (~3.2 TB/s per TC) wants bigger tiles so the ~0.35 us/step fixed cost
    # stays a small fraction of each step's DMA time; ~2 MiB already reaches
    # ~85% of HBM roofline on v5e/v6e.
    try:
        kind = jax.devices()[0].device_kind.lower()
    except Exception:
        kind = ""
    return (4 if "7" in kind else 2) * 1024 * 1024


def _largest_divisor_leq(n, cap, unit):
    """Largest multiple of `unit` that divides n and is <= cap (0 if none)."""
    d = (min(n, cap) // unit) * unit
    while d >= unit:
        if n % d == 0:
            return d
        d -= unit
    return 0


def positional_encoding(x, pe_table, dropout_p=0.1, training=False):
    """Forward: x + pe[:S] via a lane-dense Pallas kernel (eval-mode dropout = identity)."""
    # TODO(synk): training-mode nn.Dropout (Bernoulli mask + 1/(1-p) scale) is not
    # reproduced (torch RNG stream can't be matched); eval-mode forward only.
    del dropout_p, training

    B, S, D = x.shape
    # NOTE: pe is cast to x.dtype (a bf16 x adds in bf16, whereas torch would
    # upcast to f32); negligible for an add but not bit-matching for bf16.
    pe = pe_table[:S].astype(x.dtype)                                         # (S, D)

    if (S * D) % _LANE != 0:
        # Narrow / odd D: a Pallas kernel here is stuck with masked <128-lane
        # stores and tiny tiles, i.e. slower than XLA's roofline broadcast add.
        return x + pe[None]

    itemsize = jnp.dtype(x.dtype).itemsize
    pack = _sublane_pack(x.dtype)
    budget = _per_buffer_budget_bytes()

    rows = (S * D) // _LANE
    x2 = x.reshape(B, rows, _LANE)            # contiguous reshape: free bitcast view
    pe2 = pe.reshape(rows, _LANE)

    # --- row tile: biggest under the byte budget, prefer an exact divisor of rows
    max_rows = max(pack, budget // (_LANE * itemsize))
    if rows <= max_rows:
        tr = rows                             # full extent: always a legal block
    else:
        tr = (_largest_divisor_leq(rows, max_rows, pack)
              or (max_rows // pack) * pack)   # last resort: ragged final tile

    # --- batch folding: keep each x/out block ~budget-sized, prefer a divisor of B
    row_tile_bytes = tr * _LANE * itemsize
    tb_cap = max(1, budget // row_tile_bytes)
    if tb_cap >= B:
        tb = B
    else:
        tb = _largest_divisor_leq(B, tb_cap, 1) or tb_cap

    grid = (pl.cdiv(rows, tr), pl.cdiv(B, tb))   # batch innermost -> pe stays resident

    out2 = pl.pallas_call(
        _pe_add_kernel,
        out_shape=jax.ShapeDtypeStruct((B, rows, _LANE), x.dtype),
        grid_spec=pltpu.PrefetchScalarGridSpec(
            num_scalar_prefetch=0,
            grid=grid,
            in_specs=[
                pl.BlockSpec((tb, tr, _LANE), lambda r, b: (b, r, 0)),   # x slab
                pl.BlockSpec((tr, _LANE), lambda r, b: (r, 0)),          # shared pe
            ],
            out_specs=pl.BlockSpec((tb, tr, _LANE), lambda r, b: (b, r, 0)),
        ),
        # out aliases x: no second B*S*D HBM buffer when x is donated at the jit
        # boundary (without donation XLA inserts a defensive copy -- still correct).
        input_output_aliases={0: 0},
        compiler_params=pltpu.CompilerParams(
            dimension_semantics=("parallel", "parallel"),
            vmem_limit_bytes=_VMEM_LIMIT_BYTES,
        ),
    )(x2, pe2)
    return out2.reshape(B, S, D)


if __name__ == "__main__":
    MAX_LEN = 64   # keep small: the verbatim pe table overflows f32 for large positions

    # 1) Lane-dense Pallas path (S*D multiple of 128).
    B, S, D = 2, 8, 32
    key = jax.random.PRNGKey(0)
    x = jax.random.normal(key, (B, S, D), dtype=jnp.float32)
    pe_table = build_pe_table(MAX_LEN, D)

    out = jax.block_until_ready(positional_encoding(x, pe_table, dropout_p=0.1, training=False))
    ref = x + pe_table[None, :S]
    assert out.shape == (B, S, D) and out.dtype == x.dtype
    np.testing.assert_allclose(np.asarray(out), np.asarray(ref), rtol=1e-6, atol=1e-6)

    # 2) XLA fallback path (S*D not a multiple of 128, narrow D).
    D2 = 24
    x_b = jax.random.normal(jax.random.PRNGKey(1), (B, S, D2), dtype=jnp.float32)
    pe_b = build_pe_table(MAX_LEN, D2)
    out_b = jax.block_until_ready(positional_encoding(x_b, pe_b))
    np.testing.assert_allclose(np.asarray(out_b), np.asarray(x_b + pe_b[None, :S]),
                               rtol=1e-6, atol=1e-6)

    # 3) Larger lane-dense case exercising batch folding (random stand-in table
    #    since the verbatim pe formula is only finite for small positions).
    B3, S3, D3 = 4, 256, 256
    x_c = jax.random.normal(jax.random.PRNGKey(2), (B3, S3, D3), dtype=jnp.float32)
    pe_c = jax.random.normal(jax.random.PRNGKey(3), (S3, D3), dtype=jnp.float32)
    out_c = jax.block_until_ready(positional_encoding(x_c, pe_c))
    np.testing.assert_allclose(np.asarray(out_c), np.asarray(x_c + pe_c[None]),
                               rtol=1e-6, atol=1e-6)

    print("KERNEL_OK")
</pallas_src>

<mosaic_0001>
module attributes {stable_mosaic.version = 11 : i64} {
  func.func @_pe_add_kernel(%arg0: i32, %arg1: i32, %arg2: memref<2x2x128xf32, #tpu.memory_space<vmem>>, %arg3: memref<2x128xf32, #tpu.memory_space<vmem>>, %arg4: memref<2x2x128xf32, #tpu.memory_space<vmem>>) attributes {dimension_semantics = [#tpu.dimension_semantics<parallel>, #tpu.dimension_semantics<parallel>], iteration_bounds = array<i64: 1, 1>, scalar_prefetch = 0 : i64, scratch_operands = 0 : i64, tpu.core_type = #tpu.core_type<tc>, window_params = [{transform_indices = @transform_0, window_bounds = array<i64: 2, 2, 128>}, {transform_indices = @transform_1, window_bounds = array<i64: 2, 128>}, {transform_indices = @transform_2, window_bounds = array<i64: 2, 2, 128>}]} {
    %c0 = arith.constant 0 : index
    %c0_0 = arith.constant 0 : index
    %c0_1 = arith.constant 0 : index
    %0 = vector.load %arg2[%c0, %c0_0, %c0_1] : memref<2x2x128xf32, #tpu.memory_space<vmem>>, vector<2x2x128xf32>
    %c0_2 = arith.constant 0 : index
    %c0_3 = arith.constant 0 : index
    %1 = vector.load %arg3[%c0_2, %c0_3] : memref<2x128xf32, #tpu.memory_space<vmem>>, vector<2x128xf32>
    %2 = vector.shape_cast %1 : vector<2x128xf32> to vector<1x2x128xf32>
    %3 = vector.broadcast %2 : vector<1x2x128xf32> to vector<2x2x128xf32>
    %4 = arith.addf %0, %3 : vector<2x2x128xf32>
    %c0_4 = arith.constant 0 : index
    %c0_5 = arith.constant 0 : index
    %c0_6 = arith.constant 0 : index
    %5 = vector.load %arg4[%c0_4, %c0_5, %c0_6] : memref<2x2x128xf32, #tpu.memory_space<vmem>>, vector<2x2x128xf32>
    tpu.vector_store %arg4[%c0_4, %c0_5, %c0_6], %4 {strides = array<i32>} : memref<2x2x128xf32, #tpu.memory_space<vmem>>, vector<2x2x128xf32>,
    return
  }
  func.func @transform_0(%arg0: i32, %arg1: i32) -> (i32, i32, i32) {
    %c0_i32 = arith.constant 0 : i32
    %c0_i32_0 = arith.constant 0 : i32
    return %arg1, %arg0, %c0_i32 : i32, i32, i32
  }
  func.func @transform_1(%arg0: i32, %arg1: i32) -> (i32, i32) {
    %c0_i32 = arith.constant 0 : i32
    %c0_i32_0 = arith.constant 0 : i32
    return %arg0, %c0_i32 : i32, i32
  }
  func.func @transform_2(%arg0: i32, %arg1: i32) -> (i32, i32, i32) {
    %c0_i32 = arith.constant 0 : i32
    %c0_i32_0 = arith.constant 0 : i32
    return %arg1, %arg0, %c0_i32 : i32, i32, i32
  }
}

</mosaic_0001>

<bundles_post_ra>
// kernel: tpu_custom_call.1
= control target key start
LH: loop header
LB: loop body
LE: loop exit
PB: predicated region body
PF: predicated region fallthrough
CT: control target
= control target key end

     0   :  { %7 = vsyncpa [#allocation3], 0  ;;  %s138_s0 = inlined_call_operand.hbm [shape: f32[2,2,128], index: 0, kind: input, shape index: {}, may-alias: {0,2}]   ;;  %s139_s1 = inlined_call_operand.vmem [shape: f32[2,128], index: 1, kind: input, shape index: {}]   ;;  %s140_s2 = inlined_call_operand.hbm [shape: f32[2,2,128], index: 2, kind: output, shape index: {}, may-alias: {0,2}]  }
   0x1   :  { %8 = vsyncpa [#allocation4], 0  ;;  %s13_s11 = sshll.u32 %s138_s0, 4  ;;  %s110_s12 = smov [#allocation2]   ;;  %s14_s11 = int_to_ptr.hbm [resolvable:$true] %s13_s11 }
   0x2   :  { %s15_s13 = sshll.u32 %s110_s12, 4  ;;  %s111_s14 = smov 32   ;;  %s16_s13 = int_to_ptr.vmem [resolvable:$true] %s15_s13 }
   0x3   :  { %s112_s15 = smov 2  }
   0x4   :  { %21 = dma.hbm_to_vmem [thread:$0]  %s14_s11, 64, %s16_s13, [#allocation3], %s111_s14, %s111_s14, %s112_s15  }
   0x5   :  { %106 = dma.done.wait [#allocation3], 64  }
   0x6   :  { %107 = vsyncadd [#allocation3], 4294967232  ;;  %s113_s16 = smov [#allocation5]   ;;  %s41_s20 = sshll.u32 %s140_s2, 4  ;;  %v28_v0 = vld [vmem:[#allocation2] sm:$0x3]  ;;  %s42_s20 = int_to_ptr.hbm [resolvable:$true] %s41_s20 }
   0x7   :  { %s39_s17 = sshll.u32 %s113_s16, 4  ;;  %v30_v1 = vld [vmem:[%s139_s1] sm:$0x3]  ;;  %v29_v2 = vld [vmem:[#allocation2 + $0x2] sm:$0x3]  ;;  %s40_s17 = int_to_ptr.vmem [resolvable:$true] %s39_s17 }
   0x8   :  { %v31_v3 = vadd.f32 %v30_v1, %v28_v0  ;;  %v32_v4 = vadd.f32 %v30_v1, %v29_v2 }
   0xa   :  { %33 = vst [vmem:[#allocation5] sm:$0x3] %v31_v3 }
   0xb   :  { %34 = vst [vmem:[#allocation5 + $0x2] sm:$0x3] %v32_v4 }
   0xc   :  { %47 = dma.vmem_to_hbm [thread:$0]  %s40_s17, 64, %s42_s20, [#allocation4], %s111_s14, %s111_s14, %s112_s15  }
   0xd   :  { %108 = dma.done.wait [#allocation4], 64  }
   0xe   :  { %109 = vsyncadd [#allocation4], 4294967232 }
   0xf   :  { %52 = vsyncpa [#allocation3], 1 }
  0x10   :  { %53 = vsyncpa [#allocation4], 1 }

</bundles_post_ra>
